<compile_context>
chip_gen: v5e
topology: v5e:2x2
jax: 0.10.0
libtpu: 0.0.40
codegen_flags: <defaults>
</compile_context>

<pallas_src>
import functools
import math

import jax
import jax.numpy as jnp
from jax.experimental import pallas as pl
from jax.experimental.pallas import tpu as pltpu

LN_EPS = 1e-12  # config.layer_norm_eps (HF ViT default)


# ------------------------------ helpers ---------------------------------------

def _tile(dim, preferred, align):
    """Largest tile t <= preferred with dim % t == 0 and t % align == 0, else full dim."""
    if dim <= preferred:
        return dim
    t = preferred - (preferred % align)
    while t >= align:
        if dim % t == 0:
            return t
        t -= align
    return dim


def _round_up(x, m):
    return ((x + m - 1) // m) * m


def _row_pad_target(m):
    # Keep the row axis sublane-aligned; for larger M also 128-aligned so the row
    # ("parallel") grid axis tiles into >=2 well-shaped blocks (v7x: 2 TensorCores).
    return _round_up(m, 8) if m <= 256 else _round_up(m, 128)


# ------------------------------- kernels --------------------------------------

def _ln_matmul_bias_kernel(x_ref, g_ref, beta_ref, w_ref, b_ref, o_ref):
    # o = LayerNorm(x) @ w + b      (full K rows in the block -> LN fused as prologue)
    x = x_ref[...].astype(jnp.float32)
    mean = jnp.mean(x, axis=-1, keepdims=True)
    var = jnp.mean(jnp.square(x - mean), axis=-1, keepdims=True)
    xn = (x - mean) * jax.lax.rsqrt(var + LN_EPS)
    xn = xn * g_ref[...].astype(jnp.float32) + beta_ref[...].astype(jnp.float32)
    y = jnp.dot(xn.astype(jnp.bfloat16), w_ref[...],
                preferred_element_type=jnp.float32)
    o_ref[...] = (y + b_ref[...].astype(jnp.float32)).astype(o_ref.dtype)


def _matmul_bias_kernel(x_ref, w_ref, b_ref, o_ref, *, activation):
    # o = act(x @ w + b)            (full K, bf16 operands, f32 accumulation)
    y = jnp.dot(x_ref[...], w_ref[...], preferred_element_type=jnp.float32)
    y = y + b_ref[...].astype(jnp.float32)
    if activation == "gelu":
        # Megatron ParallelMLP default (bias_gelu fusion) is the tanh approximation.
        y = jax.nn.gelu(y, approximate=True)
    o_ref[...] = y.astype(o_ref.dtype)


def _matmul_res_ln_kernel(x_ref, w_ref, b_ref, res_ref, g_ref, beta_ref,
                          pre_ref, ln_ref):
    # pre = x @ w + b + res ; ln = LayerNorm(pre)     (full K, full N per block)
    pre = (jnp.dot(x_ref[...], w_ref[...], preferred_element_type=jnp.float32)
           + b_ref[...].astype(jnp.float32)
           + res_ref[...].astype(jnp.float32))
    mean = jnp.mean(pre, axis=-1, keepdims=True)
    var = jnp.mean(jnp.square(pre - mean), axis=-1, keepdims=True)
    y = (pre - mean) * jax.lax.rsqrt(var + LN_EPS)
    pre_ref[...] = pre.astype(pre_ref.dtype)
    ln_ref[...] = (y * g_ref[...].astype(jnp.float32)
                   + beta_ref[...].astype(jnp.float32)).astype(ln_ref.dtype)


def _matmul_res_kernel(x_ref, w_ref, b_ref, res_ref, o_ref, acc_ref):
    # out = x @ w + b + res         (K split over the last grid axis)
    k = pl.program_id(1)

    @pl.when(k == 0)
    def _():
        acc_ref[...] = jnp.zeros_like(acc_ref)

    acc_ref[...] += jnp.dot(x_ref[...], w_ref[...],
                            preferred_element_type=jnp.float32)

    @pl.when(k == pl.num_programs(1) - 1)
    def _():
        o_ref[...] = (acc_ref[...] + b_ref[...].astype(jnp.float32)
                      + res_ref[...].astype(jnp.float32)).astype(o_ref.dtype)


def _attention_kernel(qkv_ref, o_ref, *, heads, d, scale):
    # One batch per grid step.  qkv_ref: [S, 3H] with columns [Q(H) | K(H) | V(H)],
    # heads contiguous inside each H block.  Output written as one lane-dense [S, H]
    # slab (single store instead of per-head masked partial stores).
    hdim = heads * d
    ctxs = []
    for h in range(heads):
        q = (qkv_ref[:, h * d:(h + 1) * d].astype(jnp.float32) * scale
             ).astype(jnp.bfloat16)
        k = qkv_ref[:, hdim + h * d:hdim + (h + 1) * d]
        v = qkv_ref[:, 2 * hdim + h * d:2 * hdim + (h + 1) * d]
        s = jax.lax.dot_general(q, k, (((1,), (1,)), ((), ())),
                                preferred_element_type=jnp.float32)        # [S, S]
        m = jnp.max(s, axis=-1, keepdims=True)
        p = jnp.exp(s - m)
        p = p * pl.reciprocal(jnp.sum(p, axis=-1, keepdims=True), approx=True)
        ctxs.append(jnp.dot(p.astype(jnp.bfloat16), v,
                            preferred_element_type=jnp.float32))           # [S, d]
    o_ref[...] = jnp.concatenate(ctxs, axis=-1).astype(o_ref.dtype)
    # TODO(synk): for S >> 512 (high-res ViT) switch to a flash-style q-tile x kv-loop
    # with online softmax instead of materializing the full [S,S] f32 scores.


# ----------------------------- kernel wrappers ---------------------------------

def ln_matmul_bias(x, gamma, beta, w, b, out_dtype=jnp.bfloat16):
    """LayerNorm(x) @ w + b.  x: [M, K] f32, w: [K, N] bf16."""
    M, K = x.shape
    N = w.shape[1]
    tm = _tile(M, 512, 8)
    tn = _tile(N, 512, 128)
    grid = (M // tm, N // tn)
    cost = pl.CostEstimate(
        flops=2 * M * N * K,
        transcendentals=0,
        bytes_accessed=(N // tn) * M * K * x.dtype.itemsize
                       + (M // tm) * K * N * w.dtype.itemsize
                       + M * N * jnp.dtype(out_dtype).itemsize)
    return pl.pallas_call(
        _ln_matmul_bias_kernel,
        out_shape=jax.ShapeDtypeStruct((M, N), out_dtype),
        grid_spec=pltpu.PrefetchScalarGridSpec(
            num_scalar_prefetch=0, grid=grid,
            in_specs=[pl.BlockSpec((tm, K), lambda i, j: (i, 0)),
                      pl.BlockSpec((1, K), lambda i, j: (0, 0)),
                      pl.BlockSpec((1, K), lambda i, j: (0, 0)),
                      pl.BlockSpec((K, tn), lambda i, j: (0, j)),
                      pl.BlockSpec((1, tn), lambda i, j: (0, j))],
            out_specs=pl.BlockSpec((tm, tn), lambda i, j: (i, j))),
        compiler_params=pltpu.CompilerParams(
            dimension_semantics=("parallel", "parallel")),
        cost_estimate=cost,
    )(x, gamma.reshape(1, -1), beta.reshape(1, -1), w, b.reshape(1, -1))


def matmul_bias(x, w, b, activation=None, out_dtype=jnp.bfloat16):
    """x @ w + b (optional fused GELU).  Full-K blocks (no reduction grid axis)."""
    M, K = x.shape
    N = w.shape[1]
    tm = _tile(M, 512, 8)
    tn = _tile(N, 512, 128)
    grid = (M // tm, N // tn)
    cost = pl.CostEstimate(
        flops=2 * M * N * K,
        transcendentals=(M * N if activation == "gelu" else 0),
        bytes_accessed=(N // tn) * M * K * x.dtype.itemsize
                       + (M // tm) * K * N * w.dtype.itemsize
                       + M * N * jnp.dtype(out_dtype).itemsize)
    return pl.pallas_call(
        functools.partial(_matmul_bias_kernel, activation=activation),
        out_shape=jax.ShapeDtypeStruct((M, N), out_dtype),
        grid_spec=pltpu.PrefetchScalarGridSpec(
            num_scalar_prefetch=0, grid=grid,
            in_specs=[pl.BlockSpec((tm, K), lambda i, j: (i, 0)),
                      pl.BlockSpec((K, tn), lambda i, j: (0, j)),
                      pl.BlockSpec((1, tn), lambda i, j: (0, j))],
            out_specs=pl.BlockSpec((tm, tn), lambda i, j: (i, j))),
        compiler_params=pltpu.CompilerParams(
            dimension_semantics=("parallel", "parallel")),
        cost_estimate=cost,
    )(x, w, b.reshape(1, -1))


def matmul_bias_residual_layernorm(x, w, b, res, gamma, beta,
                                   pre_dtype=jnp.float32, ln_dtype=jnp.bfloat16):
    """pre = x @ w + b + res ; ln = LayerNorm(pre).  Full K and full N per block."""
    M, K = x.shape
    N = w.shape[1]
    tm = _tile(M, 256, 8)
    grid = (M // tm,)
    cost = pl.CostEstimate(
        flops=2 * M * N * K,
        transcendentals=0,
        bytes_accessed=M * K * x.dtype.itemsize
                       + (M // tm) * K * N * w.dtype.itemsize
                       + M * N * res.dtype.itemsize
                       + M * N * (jnp.dtype(pre_dtype).itemsize
                                  + jnp.dtype(ln_dtype).itemsize))
    return pl.pallas_call(
        _matmul_res_ln_kernel,
        out_shape=(jax.ShapeDtypeStruct((M, N), pre_dtype),
                   jax.ShapeDtypeStruct((M, N), ln_dtype)),
        grid_spec=pltpu.PrefetchScalarGridSpec(
            num_scalar_prefetch=0, grid=grid,
            in_specs=[pl.BlockSpec((tm, K), lambda i: (i, 0)),
                      pl.BlockSpec((K, N), lambda i: (0, 0)),
                      pl.BlockSpec((1, N), lambda i: (0, 0)),
                      pl.BlockSpec((tm, N), lambda i: (i, 0)),
                      pl.BlockSpec((1, N), lambda i: (0, 0)),
                      pl.BlockSpec((1, N), lambda i: (0, 0))],
            out_specs=(pl.BlockSpec((tm, N), lambda i: (i, 0)),
                       pl.BlockSpec((tm, N), lambda i: (i, 0)))),
        compiler_params=pltpu.CompilerParams(dimension_semantics=("parallel",)),
        cost_estimate=cost,
    )(x, w, b.reshape(1, -1), res, gamma.reshape(1, -1), beta.reshape(1, -1))


def matmul_bias_residual(x, w, b, res, out_dtype=jnp.float32):
    """x @ w + b + res, with the (large) K reduction split over the last grid axis."""
    M, K = x.shape
    N = w.shape[1]
    tm = _tile(M, 256, 8)
    tk = _tile(K, 1024, 128)
    grid = (M // tm, K // tk)
    cost = pl.CostEstimate(
        flops=2 * M * N * K,
        transcendentals=0,
        bytes_accessed=M * K * x.dtype.itemsize
                       + (M // tm) * K * N * w.dtype.itemsize
                       + M * N * res.dtype.itemsize
                       + M * N * jnp.dtype(out_dtype).itemsize)
    # TODO(synk): if the K-streaming DMA is exposed on v5e, add
    # pipeline_mode=pl.Buffered(3) on the weight BlockSpec.
    return pl.pallas_call(
        _matmul_res_kernel,
        out_shape=jax.ShapeDtypeStruct((M, N), out_dtype),
        grid_spec=pltpu.PrefetchScalarGridSpec(
            num_scalar_prefetch=0, grid=grid,
            in_specs=[pl.BlockSpec((tm, tk), lambda i, k: (i, k)),
                      pl.BlockSpec((tk, N), lambda i, k: (k, 0)),
                      pl.BlockSpec((1, N), lambda i, k: (0, 0)),
                      pl.BlockSpec((tm, N), lambda i, k: (i, 0))],
            out_specs=pl.BlockSpec((tm, N), lambda i, k: (i, 0)),
            scratch_shapes=[pltpu.VMEM((tm, N), jnp.float32)]),
        compiler_params=pltpu.CompilerParams(
            dimension_semantics=("parallel", "arbitrary")),
        cost_estimate=cost,
    )(x, w, b.reshape(1, -1), res)


def attention(qkv, *, heads, head_dim, scale):
    """qkv: [B, S, 3H] (bf16) -> context [B, S, H] (bf16).  One batch per grid step."""
    B, S, threeH = qkv.shape
    H = heads * head_dim
    in_spec = pl.BlockSpec((None, S, threeH), lambda b: (b, 0, 0))
    out_spec = pl.BlockSpec((None, S, H), lambda b: (b, 0, 0))
    return pl.pallas_call(
        functools.partial(_attention_kernel, heads=heads, d=head_dim, scale=scale),
        out_shape=jax.ShapeDtypeStruct((B, S, H), qkv.dtype),
        grid_spec=pltpu.PrefetchScalarGridSpec(
            num_scalar_prefetch=0, grid=(B,),
            in_specs=[in_spec],
            out_specs=out_spec),
        compiler_params=pltpu.CompilerParams(dimension_semantics=("parallel",)),
    )(qkv)


# ------------------------------ full layer -------------------------------------

def init_params(key, hidden, num_heads, ffn):
    std = 0.02
    ks = jax.random.split(key, 4)
    # Matmul weights stored in bf16 once (MXU-native, half the HBM/VMEM bytes);
    # biases and LayerNorm params stay f32.
    return {
        "num_heads": num_heads,
        "ln1_g": jnp.ones((hidden,), jnp.float32),
        "ln1_b": jnp.zeros((hidden,), jnp.float32),
        "ln2_g": jnp.ones((hidden,), jnp.float32),
        "ln2_b": jnp.zeros((hidden,), jnp.float32),
        # fused QKV layout: columns = [Q(H) | K(H) | V(H)], heads contiguous per block.
        "w_qkv": (jax.random.normal(ks[0], (hidden, 3 * hidden), jnp.float32)
                  * std).astype(jnp.bfloat16),
        "b_qkv": jnp.zeros((3 * hidden,), jnp.float32),
        "w_o": (jax.random.normal(ks[1], (hidden, hidden), jnp.float32)
                * std).astype(jnp.bfloat16),
        "b_o": jnp.zeros((hidden,), jnp.float32),
        "w_fc1": (jax.random.normal(ks[2], (hidden, ffn), jnp.float32)
                  * std).astype(jnp.bfloat16),
        "b_fc1": jnp.zeros((ffn,), jnp.float32),
        "w_fc2": (jax.random.normal(ks[3], (ffn, hidden), jnp.float32)
                  * std).astype(jnp.bfloat16),
        "b_fc2": jnp.zeros((hidden,), jnp.float32),
    }


def vit_layer_tp(hidden_states, params):
    """Forward of VitLayer_tp.  hidden_states: [B, S, H] -> [B, S, H].

    The module's permute(1,0,2) / inverse permute are dropped: every row-wise kernel
    here is permutation invariant and attention groups by batch, so we work directly on
    [B*S, H] rows (padded to a sublane/128-aligned row count for clean tiling).
    """
    B, S, H = hidden_states.shape
    heads = params["num_heads"]
    d = H // heads
    M = B * S
    M_pad = _row_pad_target(M)

    rows = hidden_states.reshape(M, H)
    if M_pad != M:
        rows = jnp.pad(rows, ((0, M_pad - M), (0, 0)))

    # --- VitAttention_tp ---
    # LayerNormBefore fused into the QKV projection (one kernel, one HBM pass of x).
    qkv = ln_matmul_bias(rows, params["ln1_g"], params["ln1_b"],
                         params["w_qkv"], params["b_qkv"])               # [M_pad, 3H] bf16

    qkv_b = qkv[:M].reshape(B, S, 3 * H)
    ctx = attention(qkv_b, heads=heads, head_dim=d,
                    scale=1.0 / math.sqrt(d))                            # [B, S, H] bf16
    ctx_rows = ctx.reshape(M, H)
    if M_pad != M:
        ctx_rows = jnp.pad(ctx_rows, ((0, M_pad - M), (0, 0)))

    # Output projection with fused (b_o + residual + LayerNormAfter) epilogue.
    # (dropout == identity in eval mode)
    before_ln, ln2 = matmul_bias_residual_layernorm(
        ctx_rows, params["w_o"], params["b_o"], rows,
        params["ln2_g"], params["ln2_b"])                                # f32, bf16

    # --- VitMLP_tp ---
    h1 = matmul_bias(ln2, params["w_fc1"], params["b_fc1"], activation="gelu")  # bf16
    out_rows = matmul_bias_residual(h1, params["w_fc2"], params["b_fc2"],
                                    before_ln)                            # f32

    return out_rows[:M].reshape(B, S, H)


# TODO(synk): nn.Dropout layers are eval-mode identities here (no RNG mask applied).

if __name__ == "__main__":
    B, S, H, HEADS = 2, 8, 32, 4
    FFN = 4 * H

    key = jax.random.PRNGKey(0)
    k_x, k_p = jax.random.split(key)
    x = jax.random.normal(k_x, (B, S, H), jnp.float32)
    params = init_params(k_p, H, HEADS, FFN)

    out = vit_layer_tp(x, params)
    out = jax.block_until_ready(out)
    assert out.shape == (B, S, H), out.shape
    assert jnp.all(jnp.isfinite(out))
    print("KERNEL_OK")
</pallas_src>

<mosaic_0001>
module attributes {stable_mosaic.version = 11 : i64} {
  func.func @_ln_matmul_bias_kernel(%arg0: i32, %arg1: i32, %arg2: memref<16x32xf32, #tpu.memory_space<vmem>>, %arg3: memref<1x32xf32, #tpu.memory_space<vmem>>, %arg4: memref<1x32xf32, #tpu.memory_space<vmem>>, %arg5: memref<32x96xbf16, #tpu.memory_space<vmem>>, %arg6: memref<1x96xf32, #tpu.memory_space<vmem>>, %arg7: memref<16x96xbf16, #tpu.memory_space<vmem>>) attributes {dimension_semantics = [#tpu.dimension_semantics<parallel>, #tpu.dimension_semantics<parallel>], iteration_bounds = array<i64: 1, 1>, scalar_prefetch = 0 : i64, scratch_operands = 0 : i64, tpu.core_type = #tpu.core_type<tc>, window_params = [{transform_indices = @transform_0, window_bounds = array<i64: 16, 32>}, {pipeline_mode = #tpu.pipeline_mode<synchronous>, transform_indices = @transform_1, window_bounds = array<i64: 1, 32>}, {pipeline_mode = #tpu.pipeline_mode<synchronous>, transform_indices = @transform_2, window_bounds = array<i64: 1, 32>}, {transform_indices = @transform_3, window_bounds = array<i64: 32, 96>}, {transform_indices = @transform_4, window_bounds = array<i64: 1, 96>}, {transform_indices = @transform_5, window_bounds = array<i64: 16, 96>}]} {
    %c0 = arith.constant 0 : index
    %c0_0 = arith.constant 0 : index
    %0 = vector.load %arg2[%c0, %c0_0] : memref<16x32xf32, #tpu.memory_space<vmem>>, vector<16x32xf32>
    %cst = arith.constant dense<0.000000e+00> : vector<16xf32>
    %1 = vector.multi_reduction <add>, %0, %cst [1] : vector<16x32xf32> to vector<16xf32>
    %2 = vector.shape_cast %1 : vector<16xf32> to vector<16x1xf32>
    %cst_1 = arith.constant 3.200000e+01 : f32
    %3 = vector.broadcast %cst_1 : f32 to vector<16x1xf32>
    %4 = arith.divf %2, %3 : vector<16x1xf32>
    %5 = vector.broadcast %4 : vector<16x1xf32> to vector<16x32xf32>
    %6 = arith.subf %0, %5 : vector<16x32xf32>
    %7 = arith.mulf %6, %6 : vector<16x32xf32>
    %cst_2 = arith.constant dense<0.000000e+00> : vector<16xf32>
    %8 = vector.multi_reduction <add>, %7, %cst_2 [1] : vector<16x32xf32> to vector<16xf32>
    %9 = vector.shape_cast %8 : vector<16xf32> to vector<16x1xf32>
    %cst_3 = arith.constant 3.200000e+01 : f32
    %10 = vector.broadcast %cst_3 : f32 to vector<16x1xf32>
    %11 = arith.divf %9, %10 : vector<16x1xf32>
    %12 = vector.broadcast %4 : vector<16x1xf32> to vector<16x32xf32>
    %13 = arith.subf %0, %12 : vector<16x32xf32>
    %cst_4 = arith.constant 9.99999996E-13 : f32
    %14 = vector.broadcast %cst_4 : f32 to vector<16x1xf32>
    %15 = arith.addf %11, %14 : vector<16x1xf32>
    %16 = math.rsqrt %15 : vector<16x1xf32>
    %17 = vector.broadcast %16 : vector<16x1xf32> to vector<16x32xf32>
    %18 = arith.mulf %13, %17 : vector<16x32xf32>
    %c0_5 = arith.constant 0 : index
    %c0_6 = arith.constant 0 : index
    %19 = vector.load %arg3[%c0_5, %c0_6] : memref<1x32xf32, #tpu.memory_space<vmem>>, vector<1x32xf32>
    %20 = vector.broadcast %19 : vector<1x32xf32> to vector<16x32xf32>
    %21 = arith.mulf %18, %20 : vector<16x32xf32>
    %c0_7 = arith.constant 0 : index
    %c0_8 = arith.constant 0 : index
    %22 = vector.load %arg4[%c0_7, %c0_8] : memref<1x32xf32, #tpu.memory_space<vmem>>, vector<1x32xf32>
    %23 = vector.broadcast %22 : vector<1x32xf32> to vector<16x32xf32>
    %24 = arith.addf %21, %23 : vector<16x32xf32>
    %25 = arith.truncf %24 : vector<16x32xf32> to vector<16x32xbf16>
    %c0_9 = arith.constant 0 : index
    %c0_10 = arith.constant 0 : index
    %26 = vector.load %arg5[%c0_9, %c0_10] : memref<32x96xbf16, #tpu.memory_space<vmem>>, vector<32x96xbf16>
    %cst_11 = arith.constant dense<0.000000e+00> : vector<16x96xf32>
    %27 = tpu.matmul %25, %26, %cst_11 {dimension_numbers = #tpu.dot_dimension_numbers<[1], [0], [0], [1], [0, 0, 1, 1], [], []>} : vector<16x32xbf16>, vector<32x96xbf16>, vector<16x96xf32> -> vector<16x96xf32>
    %c0_12 = arith.constant 0 : index
    %c0_13 = arith.constant 0 : index
    %28 = vector.load %arg6[%c0_12, %c0_13] : memref<1x96xf32, #tpu.memory_space<vmem>>, vector<1x96xf32>
    %29 = vector.broadcast %28 : vector<1x96xf32> to vector<16x96xf32>
    %30 = arith.addf %27, %29 : vector<16x96xf32>
    %31 = arith.truncf %30 : vector<16x96xf32> to vector<16x96xbf16>
    %c0_14 = arith.constant 0 : index
    %c0_15 = arith.constant 0 : index
    %32 = vector.load %arg7[%c0_14, %c0_15] : memref<16x96xbf16, #tpu.memory_space<vmem>>, vector<16x96xbf16>
    tpu.vector_store %arg7[%c0_14, %c0_15], %31 {strides = array<i32>} : memref<16x96xbf16, #tpu.memory_space<vmem>>, vector<16x96xbf16>,
    return
  }
  func.func @transform_0(%arg0: i32, %arg1: i32) -> (i32, i32) {
    %c0_i32 = arith.constant 0 : i32
    %c0_i32_0 = arith.constant 0 : i32
    return %arg0, %c0_i32 : i32, i32
  }
  func.func @transform_1(%arg0: i32, %arg1: i32) -> (i32, i32) {
    %c0_i32 = arith.constant 0 : i32
    %c0_i32_0 = arith.constant 0 : i32
    %c0_i32_1 = arith.constant 0 : i32
    return %c0_i32, %c0_i32_0 : i32, i32
  }
  func.func @transform_2(%arg0: i32, %arg1: i32) -> (i32, i32) {
    %c0_i32 = arith.constant 0 : i32
    %c0_i32_0 = arith.constant 0 : i32
    %c0_i32_1 = arith.constant 0 : i32
    return %c0_i32, %c0_i32_0 : i32, i32
  }
  func.func @transform_3(%arg0: i32, %arg1: i32) -> (i32, i32) {
    %c0_i32 = arith.constant 0 : i32
    %c0_i32_0 = arith.constant 0 : i32
    return %c0_i32, %arg1 : i32, i32
  }
  func.func @transform_4(%arg0: i32, %arg1: i32) -> (i32, i32) {
    %c0_i32 = arith.constant 0 : i32
    %c0_i32_0 = arith.constant 0 : i32
    return %c0_i32, %arg1 : i32, i32
  }
  func.func @transform_5(%arg0: i32, %arg1: i32) -> (i32, i32) {
    %c0_i32 = arith.constant 0 : i32
    return %arg0, %arg1 : i32, i32
  }
}

</mosaic_0001>

<bundles_post_ra>
// kernel: tpu_custom_call.1
= control target key start
LH: loop header
LB: loop body
LE: loop exit
PB: predicated region body
PF: predicated region fallthrough
CT: control target
= control target key end

     0   :  { %10 = vsyncpa [#allocation3], 0  ;;  %s395_s0 = inlined_call_operand.hbm [shape: f32[16,32], index: 0, kind: input, shape index: {}]   ;;  %s396_s1 = inlined_call_operand.hbm [shape: f32[1,32], index: 1, kind: input, shape index: {}]   ;;  %s397_s2 = inlined_call_operand.vmem [shape: f32[1,32], index: 2, kind: input, shape index: {}]   ;;  %s398_s3 = inlined_call_operand.hbm [shape: bf16[32,96], index: 3, kind: input, shape index: {}]   ;;  %s399_s4 = inlined_call_operand.vmem [shape: f32[1,96], index: 4, kind: input, shape index: {}]   ;;  %s400_s5 = inlined_call_operand.hbm [shape: bf16[16,96], index: 5, kind: output, shape index: {}]  }
   0x1   :  { %11 = vsyncpa [#allocation6], 0  ;;  %s31_s20 = sshll.u32 %s396_s1, 4  ;;  %s32_s20 = int_to_ptr.hbm [resolvable:$true] %s31_s20 }
   0x2   :  { %12 = vsyncpa [#allocation4], 0  ;;  %s327_s21 = smov [#allocation5]   ;;  %s17_s25 = sshll.u32 %s395_s0, 4  ;;  %s18_s25 = int_to_ptr.hbm [resolvable:$true] %s17_s25 }
   0x3   :  { %s33_s22 = sshll.u32 %s327_s21, 4  ;;  %s328_s26 = smov [#allocation2]   ;;  %s34_s22 = int_to_ptr.vmem [resolvable:$true] %s33_s22 }
   0x4   :  { %36 = dma.hbm_to_vmem [thread:$0]  %s32_s20, 16, %s34_s22, [#allocation6]  }
   0x5   :  { %s19_s27 = sshll.u32 %s328_s26, 4  ;;  %s329_s28 = smov 128   ;;  %s20_s27 = int_to_ptr.vmem [resolvable:$true] %s19_s27 }
   0x6   :  { %s330_s29 = smov 8   ;;  %s43_s1 = sshll.u32 %s398_s3, 4  ;;  %s44_s1 = int_to_ptr.hbm [resolvable:$true] %s43_s1 }
   0x7   :  { %25 = dma.hbm_to_vmem [thread:$0]  %s18_s25, 256, %s20_s27, [#allocation3], %s329_s28, %s329_s28, %s330_s29  }
   0x8   :  { %s331_s7 = smov [#allocation7]   ;;  %s332_s9 = smov 64  }
   0x9   :  { %s45_s8 = sshll.u32 %s331_s7, 4  ;;  %s333_s10 = smov 4   ;;  %s46_s8 = int_to_ptr.vmem [resolvable:$true] %s45_s8 }
   0xa   :  { %51 = dma.hbm_to_vmem [thread:$0]  %s44_s1, 256, %s46_s8, [#allocation6], %s332_s9, %s332_s9, %s333_s10  }
   0xb   :  { %321 = dma.done.wait [#allocation3], 256  }
   0xc   :  { %322 = vsyncadd [#allocation3], 4294967040 }
   0xd   :  { %323 = dma.done.wait [#allocation6], 272  }
   0xe   :  { %324 = vsyncadd [#allocation6], 4294967024  ;;  %vm69_vm0 = vcmask 261120   ;;  %v67_v0 = vld [vmem:[#allocation2] sm:$0xff]  ;;  %v68_v2 = vld [vmem:[#allocation2 + $0x8] sm:$0xff]  ;;  %v334_v4 = vmov 32.0  }
   0xf   :  { %v70_v1 = vsel %vm69_vm0, %v67_v0, 0.0  ;;  %v73_v3 = vsel %vm69_vm0, %v68_v2, 0.0  ;;  %219 = vrcp.f32 %v334_v4  ;;  %v206_v21 = vld [vmem:[#allocation7 + $0x8] sm:$0xff]  ;;  %v205_v23 = vld [vmem:[#allocation7] sm:$0xff]  ;;  %v216_v42 = vld [vmem:[#allocation5] ss:$0 sm:$0xff] }
  0x10   :  { %71 = vadd.xlane.f32.xlu0 %v70_v1  ;;  %163 = vmatpush.bf16.msra.mxu0 %v206_v21  ;;  %v217_v47 = vld [vmem:[%s397_s2] ss:$0 sm:$0xff]  ;;  %vm173_vm8 = vcmask 781312   ;;  %s335_s13 = smov [#allocation8]   ;;  %s182_s16 = sshll.u32 %s400_s5, 4  ;;  %s183_s16 = int_to_ptr.hbm [resolvable:$true] %s182_s16 }
  0x11   :  { %v218_v52 = vld [vmem:[%s399_s4] ss:$0 sm:$0xff]  ;;  %s180_s14 = sshll.u32 %s335_s13, 4  ;;  %s181_s14 = int_to_ptr.vmem [resolvable:$true] %s180_s14 }
  0x14   :  { %164 = vmatpush.bf16.msra.mxu0 %v205_v23 }
  0x15   :  { %v220_v5 = vpop.eup %219 }
  0x16   :  { %v77_v6 = vmul.f32 32.0, %v220_v5  ;;  %vm81_vm1 = vweird.f32 %v220_v5 }
  0x18   :  { %74 = vadd.xlane.f32.xlu0 %v73_v3  ;;  %v78_v7 = vsub.f32 1.0, %v77_v6 }
  0x1a   :  { %v79_v8 = vmul.f32 %v220_v5, %v78_v7 }
  0x1c   :  { %v80_v9 = vadd.f32 %v220_v5, %v79_v8 }
  0x1e   :  { %v82_v10 = vsel %vm81_vm1, %v220_v5, %v80_v9 }
  0x83   :  { %v72_v11 = vpop.xlane.xlu0 %71 }
  0x84   :  { %v83_v12 = vmul.f32 %v82_v10, %v72_v11 }
  0x86   :  { %v85_v13 = vsub.f32 %v67_v0, %v83_v12 }
  0x88   :  { %v87_v14 = vmul.f32 %v85_v13, %v85_v13 }
  0x8a   :  { %v89_v15 = vsel %vm69_vm0, %v87_v14, 0.0 }
  0x8b   :  { %90 = vadd.xlane.f32.xlu1 %v89_v15  ;;  %v75_v16 = vpop.xlane.xlu0 %74 }
  0x8c   :  { %v84_v17 = vmul.f32 %v82_v10, %v75_v16 }
  0x8e   :  { %v86_v18 = vsub.f32 %v68_v2, %v84_v17 }
  0x90   :  { %v88_v19 = vmul.f32 %v86_v18, %v86_v18 }
  0x92   :  { %v92_v20 = vsel %vm69_vm0, %v88_v19, 0.0 }
  0x93   :  { %93 = vadd.xlane.f32.xlu1 %v92_v20 }
  0xfe   :  { %v91_v22 = vpop.xlane.xlu1 %90 }
  0xff   :  { %v95_v24 = vmul.f32 %v91_v22, %v82_v10 }
 0x101   :  { %v97_v25 = vadd.f32 1e-12, %v95_v24 }
 0x103   :  { %221 = vrsqrt.f32 %v97_v25  ;;  %vm105_vm3 = vweird.f32 %v97_v25 }
 0x106   :  { %v94_v26 = vpop.xlane.xlu1 %93 }
 0x107   :  { %v96_v27 = vmul.f32 %v94_v26, %v82_v10 }
 0x109   :  { %v222_v28 = vpop.eup %221  ;;  %v98_v29 = vadd.f32 1e-12, %v96_v27 }
 0x10a   :  { %v100_v30 = vmul.f32 %v222_v28, %v97_v25  ;;  %vm106_vm2 = vweird.f32 %v222_v28 }
 0x10b   :  { %223 = vrsqrt.f32 %v98_v29  ;;  %vm107_vm4 = vmor %vm105_vm3, %vm106_vm2  ;;  %vm115_vm6 = vweird.f32 %v98_v29 }
 0x10c   :  { %v101_v31 = vmul.f32 %v222_v28, %v100_v30 }
 0x10e   :  { %v102_v32 = vmul.f32 0.5, %v101_v31 }
 0x110   :  { %v103_v33 = vsub.f32 1.5, %v102_v32 }
 0x111   :  { %v224_v34 = vpop.eup %223 }
 0x112   :  { %v104_v35 = vmul.f32 %v222_v28, %v103_v33  ;;  %v110_v36 = vmul.f32 %v224_v34, %v98_v29  ;;  %vm116_vm5 = vweird.f32 %v224_v34 }
 0x113   :  { %vm117_vm7 = vmor %vm115_vm6, %vm116_vm5 }
 0x114   :  { %v111_v37 = vmul.f32 %v224_v34, %v110_v36  ;;  %v108_v38 = vsel %vm107_vm4, %v222_v28, %v104_v35 }
 0x115   :  { %v119_v41 = vmul.f32 %v108_v38, %v85_v13 }
 0x116   :  { %v112_v39 = vmul.f32 0.5, %v111_v37 }
 0x117   :  { %v125_v46 = vmul.f32 %v216_v42, %v119_v41 }
 0x118   :  { %v113_v40 = vsub.f32 1.5, %v112_v39 }
 0x119   :  { %v131_v49 = vadd.f32 %v217_v47, %v125_v46 }
 0x11a   :  { %v114_v43 = vmul.f32 %v224_v34, %v113_v40 }
 0x11c   :  { %v118_v44 = vsel %vm117_vm7, %v224_v34, %v114_v43 }
 0x11d   :  { %v120_v45 = vmul.f32 %v118_v44, %v86_v18 }
 0x11f   :  { %v126_v48 = vmul.f32 %v216_v42, %v120_v45 }
 0x121   :  { %v132_v50 = vadd.f32 %v217_v47, %v126_v48 }
 0x123   :  { %v133_v51 = vpack.c.bf16 %v132_v50, %v131_v49 }
 0x125   :  { %204 = vmatmul.msk.bf16.vlgmr.msra.gmra.mxu0 %vm69_vm0, %v133_v51 }
 0x1a2   :  { %v166_v53 = vpop.f32.mrf.mxu0 }
 0x1a3   :  { %v167_v54 = vadd.f32 %v218_v52, %v166_v53 }
 0x1a5   :  { %v171_v55 = vpack.c.bf16 %v167_v54, %v167_v54 }
 0x1a7   :  { %174 = vst.msk [vmem:[#allocation8] sm:$0xf] %vm173_vm8, %v171_v55 }
 0x1aa   :  { %v168_v56 = vpop.f32.mrf.mxu0 }
 0x1ab   :  { %v169_v57 = vadd.f32 %v218_v52, %v168_v56 }
 0x1ad   :  { %v172_v58 = vpack.c.bf16 %v169_v57, %v169_v57 }
 0x1af   :  { %175 = vst.msk [vmem:[#allocation8 + $0x4] sm:$0xf] %vm173_vm8, %v172_v58 }
 0x1b0   :  { %188 = dma.vmem_to_hbm [thread:$0]  %s181_s14, 128, %s183_s16, [#allocation4], %s332_s9, %s332_s9, %s333_s10  }
 0x1b1   :  { %325 = dma.done.wait [#allocation4], 128  }
 0x1b2   :  { %326 = vsyncadd [#allocation4], 4294967168 }
 0x1b3   :  { %193 = vsyncpa [#allocation3], 1 }
 0x1b4   :  { %194 = vsyncpa [#allocation6], 1 }
 0x1b5   :  { %195 = vsyncpa [#allocation4], 1 }

</bundles_post_ra>
